<compile_context>
chip_gen: v5e
topology: v5e:2x2
jax: 0.10.0
libtpu: 0.0.40
codegen_flags: <defaults>
</compile_context>

<pallas_src>
import math

import jax
import jax.numpy as jnp
from jax.experimental import pallas as pl
from jax.experimental.pallas import tpu as pltpu


def _round_up(v: int, m: int) -> int:
    return ((v + m - 1) // m) * m


def _vmem_capacity_bytes() -> int:
    """Physical per-TensorCore VMEM; conservative fallback = 64 MiB (v7x)."""
    try:
        cap = int(pltpu.get_tpu_info().vmem_capacity_bytes)
        if cap > 0:
            return cap
    except Exception:
        pass
    return 64 * 1024 * 1024


def _wgcn_kernel(x_ref, nadj_ref, w_ref, b_ref, o_ref, acc_ref):
    # x_ref:    [TB, NK, F_in]      node features (this batch tile, this node chunk)
    # nadj_ref: [N, NK]             pre-normalized adjacency, columns of this chunk
    # w_ref:    [F_in, F_out_p]     weight (out features lane-padded to 128)
    # b_ref:    [1, F_out_p]        bias
    # o_ref:    [TB, N, F_out_p]    output block (resident across the k axis)
    # acc_ref:  [N, TB*F_out_p] f32 wide propagation accumulator (lane-dense)
    TB, NK, F_in = x_ref.shape
    N, Fp = o_ref.shape[1], o_ref.shape[2]
    k = pl.program_id(1)
    nk = pl.num_programs(1)

    @pl.when(k == 0)
    def _init():
        acc_ref[...] = jnp.zeros_like(acc_ref)

    w = w_ref[...]
    # ---- support = x @ W for the whole tile: one MXU call with M = TB*NK ----
    if TB == 1 or NK % 8 == 0:
        x2d = x_ref[...].reshape(TB * NK, F_in)
        support = jnp.dot(x2d, w, preferred_element_type=jnp.float32)
        support = support.reshape(TB, NK, Fp)
        sup = [support[b] for b in range(TB)]
    else:
        # Layout-safe fallback when the node chunk is not sublane-aligned.
        sup = [jnp.dot(x_ref[b], w, preferred_element_type=jnp.float32)
               for b in range(TB)]

    # ---- one wide propagation matmul: [N, NK] @ [NK, TB*Fp] keeps the MXU fed ----
    rhs = sup[0] if TB == 1 else jnp.concatenate(sup, axis=1)          # [NK, TB*Fp] f32
    prop_dtype = jnp.promote_types(x_ref.dtype, nadj_ref.dtype)        # never downcast below x
    acc_ref[...] += jnp.dot(nadj_ref[...].astype(prop_dtype),
                            rhs.astype(prop_dtype),
                            preferred_element_type=jnp.float32)

    @pl.when(k == nk - 1)
    def _finalize():
        # Hoist the bias broadcast out of the store loop; lane-dense [N, Fp] slabs out.
        bias_full = jnp.broadcast_to(b_ref[...].astype(jnp.float32), (N, Fp))
        acc = acc_ref[...]
        for b in range(TB):
            o_ref[b] = (acc[:, b * Fp:(b + 1) * Fp] + bias_full).astype(o_ref.dtype)


def weighted_gcn_layer(x, adj, weight, bias=None, *,
                       adj_block_budget_bytes=8 << 20,
                       x_tile_target_bytes=2 << 20):
    """x: [B, N, F_in], adj: [N, N], weight: [F_in, F_out], bias: [F_out] or None
    -> [B, N, F_out]"""
    B, N, F_in = x.shape
    F_in_w, F_out = weight.shape
    assert F_in_w == F_in, "weight/in_features mismatch"
    out_dtype = x.dtype
    compute_dtype = jnp.promote_types(x.dtype, adj.dtype)

    # ---- batch-invariant symmetric normalization, computed ONCE in the wrapper ----
    deg = jnp.sum(adj.astype(jnp.float32), axis=1)                      # [N]
    d = jax.lax.rsqrt(deg)
    d = jnp.where(jnp.isinf(d), jnp.float32(0.0), d)                    # deg==0 -> 0 (torch guard)
    norm_adj = (adj.astype(jnp.float32) * d[:, None] * d[None, :]).astype(compute_dtype)

    # ---- lane-dense padding of the OUTPUT feature dim only (W, bias, output) ----
    F_out_p = _round_up(F_out, 128)
    w_p = weight if F_out_p == F_out else jnp.pad(weight, ((0, 0), (0, F_out_p - F_out)))
    if bias is None:
        b2d = jnp.zeros((1, F_out_p), dtype=weight.dtype)
    else:
        b2d = bias.reshape(1, F_out)
        if F_out_p != F_out:
            b2d = jnp.pad(b2d, ((0, 0), (0, F_out_p - F_out)))

    # ---- adjacency K-tiling (columns of norm_adj / node chunks of x) ----
    adj_item = jnp.dtype(compute_dtype).itemsize
    if N * N * adj_item <= adj_block_budget_bytes:
        NK, N_k, num_k = N, N, 1
    else:
        nk_max = max(128, (adj_block_budget_bytes // (N * adj_item)) // 128 * 128)
        num_k = -(-N // nk_max)
        NK = _round_up(-(-N // num_k), 128)
        N_k = NK * num_k

    x_p, nadj_p = x, norm_adj
    if N_k != N:  # zero columns / zero feature rows contribute nothing to the sum
        x_p = jnp.pad(x_p, ((0, 0), (0, N_k - N), (0, 0)))
        nadj_p = jnp.pad(nadj_p, ((0, 0), (0, N_k - N)))

    # ---- batch tile size: ~1-4 MiB x tiles, VMEM-bounded, >=2 batch tiles, divisor of B ----
    x_item = jnp.dtype(x.dtype).itemsize
    out_item = jnp.dtype(out_dtype).itemsize
    per_elem_x = NK * F_in * x_item
    TB = max(1, min(B, x_tile_target_bytes // max(per_elem_x, 1)))
    per_tb_bytes = (2 * NK * F_in * x_item          # double-buffered x
                    + 2 * N * F_out_p * out_item    # double-buffered out
                    + N * F_out_p * 4               # f32 accumulator
                    + 3 * NK * F_out_p * 4)         # support / wide-rhs temps
    TB = max(1, min(TB, (24 << 20) // max(per_tb_bytes, 1)))
    if B >= 2:
        TB = min(TB, max(1, B // 2))                # >=2 batch tiles (v7x megacore)
    if B >= 4 and pl.cdiv(B, TB) * num_k < 4:
        TB = min(TB, max(1, B // 4))                # >=4 total grid steps when possible
    tb_div = next((t for t in range(TB, 0, -1) if B % t == 0), 1)
    if tb_div >= max(1, TB // 2):
        TB = tb_div                                 # avoid batch padding when cheap

    B_pad = _round_up(B, TB)
    if B_pad != B:
        x_p = jnp.pad(x_p, ((0, B_pad - B), (0, 0), (0, 0)))

    # ---- footprint-derived, generation-aware VMEM limit ----
    adj_bufs = 1 if num_k == 1 else 2
    w_item = jnp.dtype(w_p.dtype).itemsize
    footprint = (2 * TB * NK * F_in * x_item
                 + adj_bufs * N * NK * adj_item
                 + F_in * F_out_p * w_item
                 + F_out_p * w_item
                 + 2 * TB * N * F_out_p * out_item
                 + TB * N * F_out_p * 4
                 + 3 * TB * NK * F_out_p * 4)
    cap = _vmem_capacity_bytes()
    vmem_limit = int(min(0.75 * cap, max(1.5 * footprint, 16 << 20)))

    grid = (B_pad // TB, num_k)

    def _run(single_buffer_invariants: bool):
        inv = {"pipeline_mode": pl.Buffered(1)} if single_buffer_invariants else {}
        adj_spec = (pl.BlockSpec((N, NK), lambda b, k: (0, 0), **inv) if num_k == 1
                    else pl.BlockSpec((N, NK), lambda b, k: (0, k)))
        return pl.pallas_call(
            _wgcn_kernel,
            out_shape=jax.ShapeDtypeStruct((B_pad, N, F_out_p), out_dtype),
            grid_spec=pltpu.PrefetchScalarGridSpec(
                num_scalar_prefetch=0,
                grid=grid,
                in_specs=[
                    pl.BlockSpec((TB, NK, F_in), lambda b, k: (b, k, 0)),      # x tile
                    adj_spec,                                                  # norm_adj chunk
                    pl.BlockSpec((F_in, F_out_p), lambda b, k: (0, 0), **inv), # W (invariant)
                    pl.BlockSpec((1, F_out_p), lambda b, k: (0, 0), **inv),    # bias (invariant)
                ],
                out_specs=pl.BlockSpec((TB, N, F_out_p), lambda b, k: (b, 0, 0)),
                scratch_shapes=[pltpu.VMEM((N, TB * F_out_p), jnp.float32)],
            ),
            compiler_params=pltpu.CompilerParams(
                dimension_semantics=("parallel", "arbitrary"),
                vmem_limit_bytes=vmem_limit,
            ),
        )(x_p, nadj_p, w_p, b2d)

    try:
        out_p = _run(True)
    except Exception:
        # Fallback for Pallas builds that reject pipeline_mode / Buffered(1);
        # identical kernel with default double-buffered invariants.
        out_p = _run(False)

    return out_p[:B, :, :F_out]


def _reference(x, adj, weight, bias):
    deg = adj.sum(axis=1)
    dis = deg ** -0.5
    dis = jnp.where(jnp.isinf(dis), 0.0, dis)
    norm_adj = jnp.diag(dis) @ adj @ jnp.diag(dis)
    support = jnp.einsum("bnf,fo->bno", x, weight)
    out = jnp.einsum("nm,bmo->bno", norm_adj, support)
    return out + bias


if __name__ == "__main__":
    key = jax.random.PRNGKey(0)

    def make_case(sub, B, N, F_in, F_out):
        kx, kadj, kw = jax.random.split(sub, 3)
        x = jax.random.normal(kx, (B, N, F_in), dtype=jnp.float32)
        adj = jax.random.uniform(kadj, (N, N), dtype=jnp.float32)    # nonnegative weighted graph
        # Kaiming uniform, mode='fan_out' on an [in_features, out_features] tensor:
        # fan = in_features, gain = sqrt(2), bound = sqrt(6 / fan).
        bound = math.sqrt(6.0 / F_in)
        w = jax.random.uniform(kw, (F_in, F_out), dtype=jnp.float32,
                               minval=-bound, maxval=bound)
        b = jnp.zeros((F_out,), dtype=jnp.float32)
        return x, adj, w, b

    # (B=2 exercises TB=1; B=8 exercises the TB>1 wide-RHS path.)
    for (B, N, F_in, F_out) in [(2, 16, 32, 32), (8, 16, 32, 32)]:
        key, sub = jax.random.split(key)
        x, adj, w, b = make_case(sub, B, N, F_in, F_out)
        out = weighted_gcn_layer(x, adj, w, b)
        jax.block_until_ready(out)
        ref = _reference(x, adj, w, b)
        assert out.shape == (B, N, F_out)
        assert jnp.allclose(out, ref, atol=1e-4, rtol=1e-4), \
            f"mismatch vs reference at {(B, N, F_in, F_out)}"

    print("KERNEL_OK")
</pallas_src>

<mosaic_0001>
module attributes {stable_mosaic.version = 11 : i64} {
  func.func @_wgcn_kernel(%arg0: i32, %arg1: i32, %arg2: memref<1x16x32xf32, #tpu.memory_space<vmem>>, %arg3: memref<16x16xf32, #tpu.memory_space<vmem>>, %arg4: memref<32x128xf32, #tpu.memory_space<vmem>>, %arg5: memref<1x128xf32, #tpu.memory_space<vmem>>, %arg6: memref<1x16x128xf32, #tpu.memory_space<vmem>>, %arg7: memref<16x128xf32, #tpu.memory_space<vmem>>) attributes {dimension_semantics = [#tpu.dimension_semantics<parallel>, #tpu.dimension_semantics<arbitrary>], iteration_bounds = array<i64: 2, 1>, scalar_prefetch = 0 : i64, scratch_operands = 1 : i64, tpu.core_type = #tpu.core_type<tc>, window_params = [{transform_indices = @transform_0, window_bounds = array<i64: 1, 16, 32>}, {pipeline_mode = #tpu.pipeline_mode<synchronous>, transform_indices = @transform_1, window_bounds = array<i64: 16, 16>}, {pipeline_mode = #tpu.pipeline_mode<synchronous>, transform_indices = @transform_2, window_bounds = array<i64: 32, 128>}, {pipeline_mode = #tpu.pipeline_mode<synchronous>, transform_indices = @transform_3, window_bounds = array<i64: 1, 128>}, {transform_indices = @transform_4, window_bounds = array<i64: 1, 16, 128>}]} {
    %c0_i32 = arith.constant 0 : i32
    %0 = arith.cmpi eq, %arg1, %c0_i32 : i32
    %1 = arith.extui %0 : i1 to i32
    %c0_i32_0 = arith.constant 0 : i32
    %2 = arith.cmpi ne, %1, %c0_i32_0 : i32
    scf.if %2 {
      %cst_14 = arith.constant 0.000000e+00 : f32
      %17 = vector.broadcast %cst_14 : f32 to vector<16x128xf32>
      %c0_15 = arith.constant 0 : index
      %c0_16 = arith.constant 0 : index
      %18 = vector.load %arg7[%c0_15, %c0_16] : memref<16x128xf32, #tpu.memory_space<vmem>>, vector<16x128xf32>
      tpu.vector_store %arg7[%c0_15, %c0_16], %17 {strides = array<i32>} : memref<16x128xf32, #tpu.memory_space<vmem>>, vector<16x128xf32>,
    } else {
    }
    %c0 = arith.constant 0 : index
    %c0_1 = arith.constant 0 : index
    %3 = vector.load %arg4[%c0, %c0_1] : memref<32x128xf32, #tpu.memory_space<vmem>>, vector<32x128xf32>
    %c0_2 = arith.constant 0 : index
    %c0_3 = arith.constant 0 : index
    %c0_4 = arith.constant 0 : index
    %4 = vector.load %arg2[%c0_2, %c0_3, %c0_4] : memref<1x16x32xf32, #tpu.memory_space<vmem>>, vector<1x16x32xf32>
    %5 = vector.shape_cast %4 : vector<1x16x32xf32> to vector<16x32xf32>
    %cst = arith.constant dense<0.000000e+00> : vector<16x128xf32>
    %6 = tpu.matmul %5, %3, %cst {dimension_numbers = #tpu.dot_dimension_numbers<[1], [0], [0], [1], [0, 0, 1, 1], [], []>} : vector<16x32xf32>, vector<32x128xf32>, vector<16x128xf32> -> vector<16x128xf32>
    %7 = vector.shape_cast %6 : vector<16x128xf32> to vector<1x16x128xf32>
    %8 = vector.shape_cast %7 : vector<1x16x128xf32> to vector<16x128xf32>
    %c0_5 = arith.constant 0 : index
    %c0_6 = arith.constant 0 : index
    %9 = vector.load %arg7[%c0_5, %c0_6] : memref<16x128xf32, #tpu.memory_space<vmem>>, vector<16x128xf32>
    %c0_7 = arith.constant 0 : index
    %c0_8 = arith.constant 0 : index
    %10 = vector.load %arg3[%c0_7, %c0_8] : memref<16x16xf32, #tpu.memory_space<vmem>>, vector<16x16xf32>
    %cst_9 = arith.constant dense<0.000000e+00> : vector<16x128xf32>
    %11 = tpu.matmul %10, %8, %cst_9 {dimension_numbers = #tpu.dot_dimension_numbers<[1], [0], [0], [1], [0, 0, 1, 1], [], []>} : vector<16x16xf32>, vector<16x128xf32>, vector<16x128xf32> -> vector<16x128xf32>
    %12 = arith.addf %9, %11 : vector<16x128xf32>
    %c0_10 = arith.constant 0 : index
    %c0_11 = arith.constant 0 : index
    %13 = vector.load %arg7[%c0_10, %c0_11] : memref<16x128xf32, #tpu.memory_space<vmem>>, vector<16x128xf32>
    tpu.vector_store %arg7[%c0_10, %c0_11], %12 {strides = array<i32>} : memref<16x128xf32, #tpu.memory_space<vmem>>, vector<16x128xf32>,
    %c0_i32_12 = arith.constant 0 : i32
    %14 = arith.cmpi eq, %arg1, %c0_i32_12 : i32
    %15 = arith.extui %14 : i1 to i32
    %c0_i32_13 = arith.constant 0 : i32
    %16 = arith.cmpi ne, %15, %c0_i32_13 : i32
    scf.if %16 {
      %c0_14 = arith.constant 0 : index
      %c0_15 = arith.constant 0 : index
      %17 = vector.load %arg5[%c0_14, %c0_15] : memref<1x128xf32, #tpu.memory_space<vmem>>, vector<1x128xf32>
      %18 = vector.shape_cast %17 : vector<1x128xf32> to vector<1x128xf32>
      %19 = vector.broadcast %18 : vector<1x128xf32> to vector<16x128xf32>
      %c0_16 = arith.constant 0 : index
      %c0_17 = arith.constant 0 : index
      %20 = vector.load %arg7[%c0_16, %c0_17] : memref<16x128xf32, #tpu.memory_space<vmem>>, vector<16x128xf32>
      %21 = arith.addf %20, %19 : vector<16x128xf32>
      %c0_18 = arith.constant 0 : index
      %c0_19 = arith.constant 0 : index
      %c0_20 = arith.constant 0 : index
      %22 = vector.load %arg6[%c0_18, %c0_19, %c0_20] : memref<1x16x128xf32, #tpu.memory_space<vmem>>, vector<1x16x128xf32>
      %23 = vector.shape_cast %22 : vector<1x16x128xf32> to vector<16x128xf32>
      %24 = vector.shape_cast %21 : vector<16x128xf32> to vector<1x16x128xf32>
      tpu.vector_store %arg6[%c0_18, %c0_19, %c0_20], %24 {strides = array<i32>} : memref<1x16x128xf32, #tpu.memory_space<vmem>>, vector<1x16x128xf32>,
    } else {
    }
    return
  }
  func.func @transform_0(%arg0: i32, %arg1: i32) -> (i32, i32, i32) {
    %c0_i32 = arith.constant 0 : i32
    %c0_i32_0 = arith.constant 0 : i32
    return %arg0, %arg1, %c0_i32 : i32, i32, i32
  }
  func.func @transform_1(%arg0: i32, %arg1: i32) -> (i32, i32) {
    %c0_i32 = arith.constant 0 : i32
    %c0_i32_0 = arith.constant 0 : i32
    %c0_i32_1 = arith.constant 0 : i32
    return %c0_i32, %c0_i32_0 : i32, i32
  }
  func.func @transform_2(%arg0: i32, %arg1: i32) -> (i32, i32) {
    %c0_i32 = arith.constant 0 : i32
    %c0_i32_0 = arith.constant 0 : i32
    %c0_i32_1 = arith.constant 0 : i32
    return %c0_i32, %c0_i32_0 : i32, i32
  }
  func.func @transform_3(%arg0: i32, %arg1: i32) -> (i32, i32) {
    %c0_i32 = arith.constant 0 : i32
    %c0_i32_0 = arith.constant 0 : i32
    %c0_i32_1 = arith.constant 0 : i32
    return %c0_i32, %c0_i32_0 : i32, i32
  }
  func.func @transform_4(%arg0: i32, %arg1: i32) -> (i32, i32, i32) {
    %c0_i32 = arith.constant 0 : i32
    %c0_i32_0 = arith.constant 0 : i32
    %c0_i32_1 = arith.constant 0 : i32
    return %arg0, %c0_i32, %c0_i32_0 : i32, i32, i32
  }
}

module attributes {stable_mosaic.version = 11 : i64} {
  func.func @_wgcn_kernel(%arg0: i32, %arg1: i32, %arg2: memref<1x16x32xf32, #tpu.memory_space<vmem>>, %arg3: memref<16x16xf32, #tpu.memory_space<vmem>>, %arg4: memref<32x128xf32, #tpu.memory_space<vmem>>, %arg5: memref<1x128xf32, #tpu.memory_space<vmem>>, %arg6: memref<1x16x128xf32, #tpu.memory_space<vmem>>, %arg7: memref<16x128xf32, #tpu.memory_space<vmem>>) attributes {dimension_semantics = [#tpu.dimension_semantics<parallel>, #tpu.dimension_semantics<arbitrary>], iteration_bounds = array<i64: 2, 1>, scalar_prefetch = 0 : i64, scratch_operands = 1 : i64, tpu.core_type = #tpu.core_type<tc>, window_params = [{transform_indices = @transform_0, window_bounds = array<i64: 1, 16, 32>}, {pipeline_mode = #tpu.pipeline_mode<synchronous>, transform_indices = @transform_1, window_bounds = array<i64: 16, 16>}, {pipeline_mode = #tpu.pipeline_mode<synchronous>, transform_indices = @transform_2, window_bounds = array<i64: 32, 128>}, {pipeline_mode = #tpu.pipeline_mode<synchronous>, transform_indices = @transform_3, window_bounds = array<i64: 1, 128>}, {transform_indices = @transform_4, window_bounds = array<i64: 1, 16, 128>}]} {
    %c0_i32 = arith.constant 0 : i32
    %0 = arith.cmpi eq, %arg1, %c0_i32 : i32
    %1 = arith.extui %0 : i1 to i32
    %c0_i32_0 = arith.constant 0 : i32
    %2 = arith.cmpi ne, %1, %c0_i32_0 : i32
    scf.if %2 {
      %cst_14 = arith.constant 0.000000e+00 : f32
      %17 = vector.broadcast %cst_14 : f32 to vector<16x128xf32>
      %c0_15 = arith.constant 0 : index
      %c0_16 = arith.constant 0 : index
      %18 = vector.load %arg7[%c0_15, %c0_16] : memref<16x128xf32, #tpu.memory_space<vmem>>, vector<16x128xf32>
      tpu.vector_store %arg7[%c0_15, %c0_16], %17 {strides = array<i32>} : memref<16x128xf32, #tpu.memory_space<vmem>>, vector<16x128xf32>,
    } else {
    }
    %c0 = arith.constant 0 : index
    %c0_1 = arith.constant 0 : index
    %3 = vector.load %arg4[%c0, %c0_1] : memref<32x128xf32, #tpu.memory_space<vmem>>, vector<32x128xf32>
    %c0_2 = arith.constant 0 : index
    %c0_3 = arith.constant 0 : index
    %c0_4 = arith.constant 0 : index
    %4 = vector.load %arg2[%c0_2, %c0_3, %c0_4] : memref<1x16x32xf32, #tpu.memory_space<vmem>>, vector<1x16x32xf32>
    %5 = vector.shape_cast %4 : vector<1x16x32xf32> to vector<16x32xf32>
    %cst = arith.constant dense<0.000000e+00> : vector<16x128xf32>
    %6 = tpu.matmul %5, %3, %cst {dimension_numbers = #tpu.dot_dimension_numbers<[1], [0], [0], [1], [0, 0, 1, 1], [], []>} : vector<16x32xf32>, vector<32x128xf32>, vector<16x128xf32> -> vector<16x128xf32>
    %7 = vector.shape_cast %6 : vector<16x128xf32> to vector<1x16x128xf32>
    %8 = vector.shape_cast %7 : vector<1x16x128xf32> to vector<16x128xf32>
    %c0_5 = arith.constant 0 : index
    %c0_6 = arith.constant 0 : index
    %9 = vector.load %arg7[%c0_5, %c0_6] : memref<16x128xf32, #tpu.memory_space<vmem>>, vector<16x128xf32>
    %c0_7 = arith.constant 0 : index
    %c0_8 = arith.constant 0 : index
    %10 = vector.load %arg3[%c0_7, %c0_8] : memref<16x16xf32, #tpu.memory_space<vmem>>, vector<16x16xf32>
    %cst_9 = arith.constant dense<0.000000e+00> : vector<16x128xf32>
    %11 = tpu.matmul %10, %8, %cst_9 {dimension_numbers = #tpu.dot_dimension_numbers<[1], [0], [0], [1], [0, 0, 1, 1], [], []>} : vector<16x16xf32>, vector<16x128xf32>, vector<16x128xf32> -> vector<16x128xf32>
    %12 = arith.addf %9, %11 : vector<16x128xf32>
    %c0_10 = arith.constant 0 : index
    %c0_11 = arith.constant 0 : index
    %13 = vector.load %arg7[%c0_10, %c0_11] : memref<16x128xf32, #tpu.memory_space<vmem>>, vector<16x128xf32>
    tpu.vector_store %arg7[%c0_10, %c0_11], %12 {strides = array<i32>} : memref<16x128xf32, #tpu.memory_space<vmem>>, vector<16x128xf32>,
    %c0_i32_12 = arith.constant 0 : i32
    %14 = arith.cmpi eq, %arg1, %c0_i32_12 : i32
    %15 = arith.extui %14 : i1 to i32
    %c0_i32_13 = arith.constant 0 : i32
    %16 = arith.cmpi ne, %15, %c0_i32_13 : i32
    scf.if %16 {
      %c0_14 = arith.constant 0 : index
      %c0_15 = arith.constant 0 : index
      %17 = vector.load %arg5[%c0_14, %c0_15] : memref<1x128xf32, #tpu.memory_space<vmem>>, vector<1x128xf32>
      %18 = vector.shape_cast %17 : vector<1x128xf32> to vector<1x128xf32>
      %19 = vector.broadcast %18 : vector<1x128xf32> to vector<16x128xf32>
      %c0_16 = arith.constant 0 : index
      %c0_17 = arith.constant 0 : index
      %20 = vector.load %arg7[%c0_16, %c0_17] : memref<16x128xf32, #tpu.memory_space<vmem>>, vector<16x128xf32>
      %21 = arith.addf %20, %19 : vector<16x128xf32>
      %c0_18 = arith.constant 0 : index
      %c0_19 = arith.constant 0 : index
      %c0_20 = arith.constant 0 : index
      %22 = vector.load %arg6[%c0_18, %c0_19, %c0_20] : memref<1x16x128xf32, #tpu.memory_space<vmem>>, vector<1x16x128xf32>
      %23 = vector.shape_cast %22 : vector<1x16x128xf32> to vector<16x128xf32>
      %24 = vector.shape_cast %21 : vector<16x128xf32> to vector<1x16x128xf32>
      tpu.vector_store %arg6[%c0_18, %c0_19, %c0_20], %24 {strides = array<i32>} : memref<1x16x128xf32, #tpu.memory_space<vmem>>, vector<1x16x128xf32>,
    } else {
    }
    return
  }
  func.func @transform_0(%arg0: i32, %arg1: i32) -> (i32, i32, i32) {
    %c0_i32 = arith.constant 0 : i32
    %c0_i32_0 = arith.constant 0 : i32
    return %arg0, %arg1, %c0_i32 : i32, i32, i32
  }
  func.func @transform_1(%arg0: i32, %arg1: i32) -> (i32, i32) {
    %c0_i32 = arith.constant 0 : i32
    %c0_i32_0 = arith.constant 0 : i32
    %c0_i32_1 = arith.constant 0 : i32
    return %c0_i32, %c0_i32_0 : i32, i32
  }
  func.func @transform_2(%arg0: i32, %arg1: i32) -> (i32, i32) {
    %c0_i32 = arith.constant 0 : i32
    %c0_i32_0 = arith.constant 0 : i32
    %c0_i32_1 = arith.constant 0 : i32
    return %c0_i32, %c0_i32_0 : i32, i32
  }
  func.func @transform_3(%arg0: i32, %arg1: i32) -> (i32, i32) {
    %c0_i32 = arith.constant 0 : i32
    %c0_i32_0 = arith.constant 0 : i32
    %c0_i32_1 = arith.constant 0 : i32
    return %c0_i32, %c0_i32_0 : i32, i32
  }
  func.func @transform_4(%arg0: i32, %arg1: i32) -> (i32, i32, i32) {
    %c0_i32 = arith.constant 0 : i32
    %c0_i32_0 = arith.constant 0 : i32
    %c0_i32_1 = arith.constant 0 : i32
    return %arg0, %c0_i32, %c0_i32_0 : i32, i32, i32
  }
}

</mosaic_0001>

<bundles_post_ra>
// kernel: tpu_custom_call.1
= control target key start
LH: loop header
LB: loop body
LE: loop exit
PB: predicated region body
PF: predicated region fallthrough
CT: control target
= control target key end

     0   :  { %s970_s0 = inlined_call_operand.hbm [shape: f32[2,16,32], index: 0, kind: input, shape index: {}]   ;;  %s971_s1 = inlined_call_operand.hbm [shape: f32[16,16], index: 1, kind: input, shape index: {}]   ;;  %s972_s2 = inlined_call_operand.hbm [shape: f32[32,128], index: 2, kind: input, shape index: {}]   ;;  %s973_s3 = inlined_call_operand.vmem [shape: f32[1,128], index: 3, kind: input, shape index: {}]   ;;  %s974_s4 = inlined_call_operand.hbm [shape: f32[2,16,128], index: 4, kind: output, shape index: {}]  }
   0x1   :  { %976 = sst [smem:[#allocation13_spill]] %s971_s1 }
   0x2   :  { %9 = vsyncpa [#allocation4], 0 }
   0x3   :  { %11 = vsyncpa [#allocation4 + $0x1], 0 }
   0x4   :  { %12 = vsyncpa [#allocation7], 0 }
   0x5   :  { %13 = vsyncpa [#allocation5], 0 }
   0x6   :  { %15 = vsyncpa [#allocation5 + $0x1], 0  ;;  %s808_s15 = smov 0   ;;  %s810_s16 = smov 0  }
   0x7   :  { %s812_s17 = smov 0   ;;  %s814_s18 = smov 0  }
   0x8   :  { %s816_s19 = smov 0   ;;  %s818_s20 = smov 0  }
   0x9 LB: > { %s480_s21 = sadd.s32 4294967295, %s775_s20   ;;  %s481_s22 = sadd.s32 4294967294, %s775_s20   ;;  %s775_s20 = sphi %s818_s20, %s21_s20   ;;  %s771_s19 = sphi %s816_s19, %s988_s19   ;;  %s767_s18 = sphi %s814_s18, %s987_s18   ;;  %s763_s17 = sphi %s812_s17, %s986_s17   ;;  %s759_s16 = sphi %s810_s16, %s985_s16   ;;  %s755_s15 = sphi %s808_s15, %s984_s15  }
   0xa   : > { %p55_p0 = scmp.ne.s32.totalorder %s759_s16, %s755_s15  ;;  %p844_p1 = scmp.eq.s32.totalorder %s480_s21, 0 }
   0xb   : > { %p148_p2 = scmp.eq.s32.totalorder %s481_s22, 1  ;;  %p482_p4 = scmp.ge.s32.totalorder %s775_s20, 1 }
   0xc   : > { %p850_p3 = por %p844_p1, %p55_p0  ;;  %p155_p6 = scmp.lt.s32.totalorder %s775_s20, 3 }
   0xd   : > { %p855_p5 = por %p148_p2, %p55_p0  ;;  %s980_s1 = sld [smem:[#allocation13_spill]] }
   0xe   : > { %p863_p7 = pnand %p482_p4, %p155_p6  ;;  %s777_s30 = smov [#allocation6]  }
   0xf   : > { %s168_s5 = sshll.u32 %s777_s30, 4  ;;  %p485_p10 = scmp.ge.s32.totalorder %s775_s20, 2  ;;  %s169_s5 = int_to_ptr.vmem [resolvable:$true] %s168_s5 }
  0x10   : > { %p523_p8 = pneg %p863_p7  ;;  %s180_s8 = sshll.u32 %s972_s2, 4  ;;  %s181_s8 = int_to_ptr.hbm [resolvable:$true] %s180_s8 }
  0x11   : > { %s975_s9 = smov 128   ;;  %s779_s10 = smov 8  }
  0x12   : > { %p524_p9 = pnand %p523_p8, %p844_p1  ;;  %s780_s11 = smov [#allocation8]  }
  0x13   : > { %s166_s28 = sshll.u32 %s980_s1, 4  ;;  %s182_s12 = sshll.u32 %s780_s11, 4  ;;  %s167_s28 = int_to_ptr.hbm [resolvable:$true] %s166_s28  ;;  %s183_s12 = int_to_ptr.vmem [resolvable:$true] %s182_s12 }
  0x14   : > { %526 = dma.hbm_to_vmem [thread:$0]  (!%p524_p9), %s167_s28, 256, %s169_s5, [#allocation7], %s975_s9, %s975_s9, %s779_s10  }
  0x15   : > { %529 = dma.hbm_to_vmem [thread:$0]  (!%p524_p9), %s181_s8, 512, %s183_s12, [#allocation7], %s975_s9, %s975_s9, %s779_s10  }
  0x16   : > { %p142_p11 = scmp.eq.s32.totalorder %s480_s21, 1  ;;  %s33_s13 = sadd.s32 1, %s771_s19 }
  0x17   : > { %p35_p12 = scmp.ge.s32.totalorder %s33_s13, 2  ;;  %s42_s14 = sadd.s32 1, %s763_s17 }
  0x18   : > { %p49_p13 = scmp.ne.s32.totalorder %s763_s17, %s759_s16  ;;  %p50_p0 = scmp.eq.s32.totalorder %s775_s20, 0 }
  0x19   : > { %s990_s13 = smov (%p35_p12, %s33_s13), 0  ;;  %p540_p4 = scmp.lt.s32.totalorder %s775_s20, 2 }
  0x1a   : > { %p890_p2 = por %p142_p11, %p49_p13  ;;  %s37_s26 = ssub.s32 %s771_s19, %s990_s13 }
  0x1b   : > { %s199_s27 = sand.u32 1, %s763_s17   ;;  %p40_p6 = scmp.eq.s32.totalorder %s37_s26, 0 }
  0x1c   : > { %p51_p8 = por %p50_p0, %p49_p13  ;;  %s486_s28 = sshll.u32 %s199_s27, 4 }
  0x1d   : > { %s503_s21 = sshll.u32 %s771_s19, 4  ;;  %s203_s11 = scalar_lea.vmem [#allocation3], %s486_s28 }
  0x1e   : > { %s900_s30 = scalar_select %p40_p6, %s763_s17, %s42_s14  }
  0x1f   : > { %s210_s7 = scalar_lea.hbm %s970_s0, %s503_s21  ;;  %s213_s12 = sshll.u32 %s203_s11, 4  ;;  %s214_s12 = int_to_ptr.vmem [resolvable:$true] %s213_s12 }
  0x20   : > { %s211_s8 = sshll.u32 %s210_s7, 4  ;;  %p531_p9 = pnand %p540_p4, %p51_p8  ;;  %s212_s8 = int_to_ptr.hbm [resolvable:$true] %s211_s8 }
  0x21   : > { %s200_s9 = scalar_lea.sflag [#allocation4], %s199_s27  ;;  %s983_s1 = smov 128  }
  0x22   : > { %533 = dma.hbm_to_vmem [thread:$0]  (!%p531_p9), %s212_s8, 256, %s214_s12, %s200_s9, %s983_s1, %s983_s1, %s779_s10  }
  0x23   : > { %225 = sbr.rel (%p863_p7) target bundleno = 324 (0x144), region = 36  ;;  %s913_s14 = sand.u32 (!%p863_p7), 1, %s759_s16  }
  0x24   : > { %s490_s26 = sshll.u32 (!%p863_p7), %s913_s14, 4  ;;  %s228_s28 = scalar_lea.sflag (!%p863_p7), [#allocation4], %s913_s14 }
  0x25   : > { %s231_s21 = scalar_lea.vmem (!%p863_p7), [#allocation3], %s490_s26 }
  0x28   : > { %742 = dma.done.wait (%p850_p3), %s228_s28, 256  }
  0x29   : > { %744 = vsyncadd (%p850_p3), %s228_s28, 4294967040 }
  0x2a   : > { %746 = dma.done.wait (%p844_p1), [#allocation7], 768  }
  0x2b   : > { %748 = vsyncadd (%p844_p1), [#allocation7], 4294966528  ;;  %v277_v0 = vld [vmem:[#allocation8 + $0x18] sm:$0xff]  ;;  %v276_v1 = vld [vmem:[#allocation8 + $0x10] sm:$0xff]  ;;  %vm280_vm0 = vcmask 261120   ;;  %vm314_vm1 = vcmask 130048  }
  0x2c   : > { %505 = vmatpush.msra.mxu2 %v277_v0  ;;  %299 = vmatpush.msra.mxu0 %v277_v0  ;;  %v275_v2 = vld [vmem:[#allocation8 + $0x8] sm:$0xff]  ;;  %v274_v3 = vld [vmem:[#allocation8] sm:$0xff]  ;;  %v313_v8 = vld [vmem:[#allocation6 + $0x8] sm:$0xff]  ;;  %s504_s24 = sshll.u32 %s767_s18, 4  ;;  %s266_s27 = scalar_lea.vmem [#allocation9], %s490_s26 }
  0x2d   : > { %v279_v4 = vld [vmem:[%s231_s21 + $0x8] sm:$0xff]  ;;  %v278_v5 = vld [vmem:[%s231_s21] sm:$0xff]  ;;  %s373_s10 = scalar_lea.hbm %s974_s4, %s504_s24  ;;  %s374_s5 = sshll.u32 %s266_s27, 4  ;;  %s375_s5 = int_to_ptr.vmem [resolvable:$true] %s374_s5 }
  0x2e   : > { %506 = vmatpush.msra.mxu2 %v276_v1  ;;  %300 = vmatpush.msra.mxu0 %v276_v1  ;;  %v312_v9 = vld [vmem:[#allocation6] sm:$0xff]  ;;  %s376_s6 = sshll.u32 %s373_s10, 4  ;;  %s362_s7 = scalar_lea.sflag [#allocation5], %s913_s14  ;;  %s377_s6 = int_to_ptr.hbm [resolvable:$true] %s376_s6 }
  0x2f   : > { %v598_v10 = vld [vmem:[%s973_s3] ss:$0 sm:$0xff]  ;;  %s703_s8 = sshra.s32 %s377_s6, 4  ;;  %s709_s26 = scalar_lea.hbm %s974_s4, 32  ;;  %s704_s8 = int_to_ptr.hbm [resolvable:$true] %s703_s8 }
  0x30   : > { %507 = vmatpush.msra.mxu2 %v275_v2  ;;  %301 = vmatpush.msra.mxu0 %v275_v2  ;;  %s705_s18 = scalar_lea.hbm %s704_s8, 16  ;;  %p710_p11 = scmp.lt.s32.totalorder %s704_s8, %s974_s4 }
  0x31   : > { %p706_p1 = scmp.ne.s32.totalorder %s704_s8, %s705_s18  ;;  %p711_p12 = scmp.lt.s32.totalorder %s709_s26, %s705_s18 }
  0x32   : > { %508 = vmatpush.msra.mxu2 %v274_v3  ;;  %302 = vmatpush.msra.mxu0 %v274_v3 }
  0x33   : > { %495 = vmatmul.msk.f32.vlgmr.msra.gmra.mxu2 %vm280_vm0, %v279_v4  ;;  %494 = vmatmul.msk.f32.vlgmr.msra.gmra.mxu0 %vm280_vm0, %v278_v5  ;;  %p707_p3 = pnand %p706_p1, %p890_p2  ;;  %p712_p13 = por %p711_p12, %p710_p11 }
  0x35   : > { %p708_p7 = pneg %p707_p3 }
  0x37   : > { %p713_p0 = pnand %p712_p13, %p708_p7 }
  0xb0   : > { %v304_v7 = vpop.f32.mrf.mxu0 }
  0xb6   : > { %v307_v6 = vpop.f32.mrf.mxu2 }
  0xb7   : > { %335 = vmatpush.msra.mxu1 %v307_v6  ;;  %509 = vmatpush.msra.mxu3 %v307_v6 }
  0xb9   : > { %336 = vmatpush.msra.mxu1 %v304_v7  ;;  %510 = vmatpush.msra.mxu3 %v304_v7 }
  0xba   : > { %497 = vmatmul.msk.f32.vlgmr.msra.gmra.mxu3 %vm314_vm1, %v313_v8  ;;  %496 = vmatmul.msk.f32.vlgmr.msra.gmra.mxu1 %vm314_vm1, %v312_v9 }
 0x137   : > { %v338_v11 = vpop.f32.mrf.mxu1 }
 0x138   : > { %v357_v12 = vadd.f32 %v598_v10, %v338_v11 }
 0x13a   : > { %359 = vst [vmem:[%s266_s27] sm:$0xff] %v357_v12 }
 0x13d   : > { %v341_v13 = vpop.f32.mrf.mxu3 }
 0x13e   : > { %v358_v14 = vadd.f32 %v598_v10, %v341_v13 }
 0x140   : > { %360 = vst [vmem:[%s266_s27 + $0x8] sm:$0xff] %v358_v14 }
 0x141   : > { %716 = shalt.err (!%p713_p0)
}
 0x142   : > { %s781_s14 = smov 128   ;;  %s782_s1 = smov 8  }
 0x143   : > { %521 = dma.vmem_to_hbm [thread:$0]  (%p890_p2), %s375_s5, 256, %s377_s6, %s362_s7, %s781_s14, %s781_s14, %s782_s1  }
 0x144 PF: > { %s391_s23 = sand.u32 1, %s755_s15   ;;  %p535_p4 = pnand %p485_p10, %p855_p5 }
 0x145   : > { %s392_s24 = scalar_lea.sflag [#allocation5], %s391_s23 }
 0x146   : > { %p536_p6 = pneg %p535_p4 }
 0x148   : > { %750 = dma.done.wait (%p536_p6), %s392_s24, 256  }
 0x149   : > { %752 = vsyncadd (%p536_p6), %s392_s24, 4294967040  ;;  %s21_s20 = sadd.s32 1, %s775_s20   ;;  %s984_s15 = smov %s759_s16 }
 0x14a   : > { %p18_p8 = scmp.ge.s32.totalorder %s21_s20, 4   ;;  %s985_s16 = smov %s763_s17 }
 0x14b   : > { %s986_s17 = smov %s900_s30  ;;  %s987_s18 = smov %s771_s19 }
 0x14c   : > { %s988_s19 = smov %s990_s13  ;;  %20 = sbr.rel (!%p18_p8) target bundleno = 9 (0x9), region = 97 }
 0x151   :  { %398 = vsyncpa [#allocation4], 1 }
 0x152   :  { %400 = vsyncpa [#allocation4 + $0x1], 1 }
 0x153   :  { %401 = vsyncpa [#allocation7], 1 }
 0x154   :  { %402 = vsyncpa [#allocation5], 1 }
 0x155   :  { %404 = vsyncpa [#allocation5 + $0x1], 1 }

// kernel: tpu_custom_call.1
= control target key start
LH: loop header
LB: loop body
LE: loop exit
PB: predicated region body
PF: predicated region fallthrough
CT: control target
= control target key end

     0   :  { %s970_s0 = inlined_call_operand.hbm [shape: f32[2,16,32], index: 0, kind: input, shape index: {}]   ;;  %s971_s1 = inlined_call_operand.hbm [shape: f32[16,16], index: 1, kind: input, shape index: {}]   ;;  %s972_s2 = inlined_call_operand.hbm [shape: f32[32,128], index: 2, kind: input, shape index: {}]   ;;  %s973_s3 = inlined_call_operand.vmem [shape: f32[1,128], index: 3, kind: input, shape index: {}]   ;;  %s974_s4 = inlined_call_operand.hbm [shape: f32[2,16,128], index: 4, kind: output, shape index: {}]  }
   0x1   :  { %976 = sst [smem:[#allocation13_spill]] %s971_s1 }
   0x2   :  { %9 = vsyncpa [#allocation4], 0 }
   0x3   :  { %11 = vsyncpa [#allocation4 + $0x1], 0 }
   0x4   :  { %12 = vsyncpa [#allocation7], 0 }
   0x5   :  { %13 = vsyncpa [#allocation5], 0 }
   0x6   :  { %15 = vsyncpa [#allocation5 + $0x1], 0  ;;  %s808_s15 = smov 0   ;;  %s810_s16 = smov 0  }
   0x7   :  { %s812_s17 = smov 0   ;;  %s814_s18 = smov 0  }
   0x8   :  { %s816_s19 = smov 0   ;;  %s818_s20 = smov 0  }
   0x9 LB: > { %s480_s21 = sadd.s32 4294967295, %s775_s20   ;;  %s481_s22 = sadd.s32 4294967294, %s775_s20   ;;  %s775_s20 = sphi %s818_s20, %s21_s20   ;;  %s771_s19 = sphi %s816_s19, %s988_s19   ;;  %s767_s18 = sphi %s814_s18, %s987_s18   ;;  %s763_s17 = sphi %s812_s17, %s986_s17   ;;  %s759_s16 = sphi %s810_s16, %s985_s16   ;;  %s755_s15 = sphi %s808_s15, %s984_s15  }
   0xa   : > { %p55_p0 = scmp.ne.s32.totalorder %s759_s16, %s755_s15  ;;  %p844_p1 = scmp.eq.s32.totalorder %s480_s21, 0 }
   0xb   : > { %p148_p2 = scmp.eq.s32.totalorder %s481_s22, 1  ;;  %p482_p4 = scmp.ge.s32.totalorder %s775_s20, 1 }
   0xc   : > { %p850_p3 = por %p844_p1, %p55_p0  ;;  %p155_p6 = scmp.lt.s32.totalorder %s775_s20, 3 }
   0xd   : > { %p855_p5 = por %p148_p2, %p55_p0  ;;  %s980_s1 = sld [smem:[#allocation13_spill]] }
   0xe   : > { %p863_p7 = pnand %p482_p4, %p155_p6  ;;  %s777_s30 = smov [#allocation6]  }
   0xf   : > { %s168_s5 = sshll.u32 %s777_s30, 4  ;;  %p485_p10 = scmp.ge.s32.totalorder %s775_s20, 2  ;;  %s169_s5 = int_to_ptr.vmem [resolvable:$true] %s168_s5 }
  0x10   : > { %p523_p8 = pneg %p863_p7  ;;  %s180_s8 = sshll.u32 %s972_s2, 4  ;;  %s181_s8 = int_to_ptr.hbm [resolvable:$true] %s180_s8 }
  0x11   : > { %s975_s9 = smov 128   ;;  %s779_s10 = smov 8  }
  0x12   : > { %p524_p9 = pnand %p523_p8, %p844_p1  ;;  %s780_s11 = smov [#allocation8]  }
  0x13   : > { %s166_s28 = sshll.u32 %s980_s1, 4  ;;  %s182_s12 = sshll.u32 %s780_s11, 4  ;;  %s167_s28 = int_to_ptr.hbm [resolvable:$true] %s166_s28  ;;  %s183_s12 = int_to_ptr.vmem [resolvable:$true] %s182_s12 }
  0x14   : > { %526 = dma.hbm_to_vmem [thread:$0]  (!%p524_p9), %s167_s28, 256, %s169_s5, [#allocation7], %s975_s9, %s975_s9, %s779_s10  }
  0x15   : > { %529 = dma.hbm_to_vmem [thread:$0]  (!%p524_p9), %s181_s8, 512, %s183_s12, [#allocation7], %s975_s9, %s975_s9, %s779_s10  }
  0x16   : > { %p142_p11 = scmp.eq.s32.totalorder %s480_s21, 1  ;;  %s33_s13 = sadd.s32 1, %s771_s19 }
  0x17   : > { %p35_p12 = scmp.ge.s32.totalorder %s33_s13, 2  ;;  %s42_s14 = sadd.s32 1, %s763_s17 }
  0x18   : > { %p49_p13 = scmp.ne.s32.totalorder %s763_s17, %s759_s16  ;;  %p50_p0 = scmp.eq.s32.totalorder %s775_s20, 0 }
  0x19   : > { %s990_s13 = smov (%p35_p12, %s33_s13), 0  ;;  %p540_p4 = scmp.lt.s32.totalorder %s775_s20, 2 }
  0x1a   : > { %p890_p2 = por %p142_p11, %p49_p13  ;;  %s37_s26 = ssub.s32 %s771_s19, %s990_s13 }
  0x1b   : > { %s199_s27 = sand.u32 1, %s763_s17   ;;  %p40_p6 = scmp.eq.s32.totalorder %s37_s26, 0 }
  0x1c   : > { %p51_p8 = por %p50_p0, %p49_p13  ;;  %s486_s28 = sshll.u32 %s199_s27, 4 }
  0x1d   : > { %s503_s21 = sshll.u32 %s771_s19, 4  ;;  %s203_s11 = scalar_lea.vmem [#allocation3], %s486_s28 }
  0x1e   : > { %s900_s30 = scalar_select %p40_p6, %s763_s17, %s42_s14  }
  0x1f   : > { %s210_s7 = scalar_lea.hbm %s970_s0, %s503_s21  ;;  %s213_s12 = sshll.u32 %s203_s11, 4  ;;  %s214_s12 = int_to_ptr.vmem [resolvable:$true] %s213_s12 }
  0x20   : > { %s211_s8 = sshll.u32 %s210_s7, 4  ;;  %p531_p9 = pnand %p540_p4, %p51_p8  ;;  %s212_s8 = int_to_ptr.hbm [resolvable:$true] %s211_s8 }
  0x21   : > { %s200_s9 = scalar_lea.sflag [#allocation4], %s199_s27  ;;  %s983_s1 = smov 128  }
  0x22   : > { %533 = dma.hbm_to_vmem [thread:$0]  (!%p531_p9), %s212_s8, 256, %s214_s12, %s200_s9, %s983_s1, %s983_s1, %s779_s10  }
  0x23   : > { %225 = sbr.rel (%p863_p7) target bundleno = 324 (0x144), region = 36  ;;  %s913_s14 = sand.u32 (!%p863_p7), 1, %s759_s16  }
  0x24   : > { %s490_s26 = sshll.u32 (!%p863_p7), %s913_s14, 4  ;;  %s228_s28 = scalar_lea.sflag (!%p863_p7), [#allocation4], %s913_s14 }
  0x25   : > { %s231_s21 = scalar_lea.vmem (!%p863_p7), [#allocation3], %s490_s26 }
  0x28   : > { %742 = dma.done.wait (%p850_p3), %s228_s28, 256  }
  0x29   : > { %744 = vsyncadd (%p850_p3), %s228_s28, 4294967040 }
  0x2a   : > { %746 = dma.done.wait (%p844_p1), [#allocation7], 768  }
  0x2b   : > { %748 = vsyncadd (%p844_p1), [#allocation7], 4294966528  ;;  %v277_v0 = vld [vmem:[#allocation8 + $0x18] sm:$0xff]  ;;  %v276_v1 = vld [vmem:[#allocation8 + $0x10] sm:$0xff]  ;;  %vm280_vm0 = vcmask 261120   ;;  %vm314_vm1 = vcmask 130048  }
  0x2c   : > { %505 = vmatpush.msra.mxu2 %v277_v0  ;;  %299 = vmatpush.msra.mxu0 %v277_v0  ;;  %v275_v2 = vld [vmem:[#allocation8 + $0x8] sm:$0xff]  ;;  %v274_v3 = vld [vmem:[#allocation8] sm:$0xff]  ;;  %v313_v8 = vld [vmem:[#allocation6 + $0x8] sm:$0xff]  ;;  %s504_s24 = sshll.u32 %s767_s18, 4  ;;  %s266_s27 = scalar_lea.vmem [#allocation9], %s490_s26 }
  0x2d   : > { %v279_v4 = vld [vmem:[%s231_s21 + $0x8] sm:$0xff]  ;;  %v278_v5 = vld [vmem:[%s231_s21] sm:$0xff]  ;;  %s373_s10 = scalar_lea.hbm %s974_s4, %s504_s24  ;;  %s374_s5 = sshll.u32 %s266_s27, 4  ;;  %s375_s5 = int_to_ptr.vmem [resolvable:$true] %s374_s5 }
  0x2e   : > { %506 = vmatpush.msra.mxu2 %v276_v1  ;;  %300 = vmatpush.msra.mxu0 %v276_v1  ;;  %v312_v9 = vld [vmem:[#allocation6] sm:$0xff]  ;;  %s376_s6 = sshll.u32 %s373_s10, 4  ;;  %s362_s7 = scalar_lea.sflag [#allocation5], %s913_s14  ;;  %s377_s6 = int_to_ptr.hbm [resolvable:$true] %s376_s6 }
  0x2f   : > { %v598_v10 = vld [vmem:[%s973_s3] ss:$0 sm:$0xff]  ;;  %s703_s8 = sshra.s32 %s377_s6, 4  ;;  %s709_s26 = scalar_lea.hbm %s974_s4, 32  ;;  %s704_s8 = int_to_ptr.hbm [resolvable:$true] %s703_s8 }
  0x30   : > { %507 = vmatpush.msra.mxu2 %v275_v2  ;;  %301 = vmatpush.msra.mxu0 %v275_v2  ;;  %s705_s18 = scalar_lea.hbm %s704_s8, 16  ;;  %p710_p11 = scmp.lt.s32.totalorder %s704_s8, %s974_s4 }
  0x31   : > { %p706_p1 = scmp.ne.s32.totalorder %s704_s8, %s705_s18  ;;  %p711_p12 = scmp.lt.s32.totalorder %s709_s26, %s705_s18 }
  0x32   : > { %508 = vmatpush.msra.mxu2 %v274_v3  ;;  %302 = vmatpush.msra.mxu0 %v274_v3 }
  0x33   : > { %495 = vmatmul.msk.f32.vlgmr.msra.gmra.mxu2 %vm280_vm0, %v279_v4  ;;  %494 = vmatmul.msk.f32.vlgmr.msra.gmra.mxu0 %vm280_vm0, %v278_v5  ;;  %p707_p3 = pnand %p706_p1, %p890_p2  ;;  %p712_p13 = por %p711_p12, %p710_p11 }
  0x35   : > { %p708_p7 = pneg %p707_p3 }
  0x37   : > { %p713_p0 = pnand %p712_p13, %p708_p7 }
  0xb0   : > { %v304_v7 = vpop.f32.mrf.mxu0 }
  0xb6   : > { %v307_v6 = vpop.f32.mrf.mxu2 }
  0xb7   : > { %335 = vmatpush.msra.mxu1 %v307_v6  ;;  %509 = vmatpush.msra.mxu3 %v307_v6 }
  0xb9   : > { %336 = vmatpush.msra.mxu1 %v304_v7  ;;  %510 = vmatpush.msra.mxu3 %v304_v7 }
  0xba   : > { %497 = vmatmul.msk.f32.vlgmr.msra.gmra.mxu3 %vm314_vm1, %v313_v8  ;;  %496 = vmatmul.msk.f32.vlgmr.msra.gmra.mxu1 %vm314_vm1, %v312_v9 }
 0x137   : > { %v338_v11 = vpop.f32.mrf.mxu1 }
 0x138   : > { %v357_v12 = vadd.f32 %v598_v10, %v338_v11 }
 0x13a   : > { %359 = vst [vmem:[%s266_s27] sm:$0xff] %v357_v12 }
 0x13d   : > { %v341_v13 = vpop.f32.mrf.mxu3 }
 0x13e   : > { %v358_v14 = vadd.f32 %v598_v10, %v341_v13 }
 0x140   : > { %360 = vst [vmem:[%s266_s27 + $0x8] sm:$0xff] %v358_v14 }
 0x141   : > { %716 = shalt.err (!%p713_p0)
}
 0x142   : > { %s781_s14 = smov 128   ;;  %s782_s1 = smov 8  }
 0x143   : > { %521 = dma.vmem_to_hbm [thread:$0]  (%p890_p2), %s375_s5, 256, %s377_s6, %s362_s7, %s781_s14, %s781_s14, %s782_s1  }
 0x144 PF: > { %s391_s23 = sand.u32 1, %s755_s15   ;;  %p535_p4 = pnand %p485_p10, %p855_p5 }
 0x145   : > { %s392_s24 = scalar_lea.sflag [#allocation5], %s391_s23 }
 0x146   : > { %p536_p6 = pneg %p535_p4 }
 0x148   : > { %750 = dma.done.wait (%p536_p6), %s392_s24, 256  }
 0x149   : > { %752 = vsyncadd (%p536_p6), %s392_s24, 4294967040  ;;  %s21_s20 = sadd.s32 1, %s775_s20   ;;  %s984_s15 = smov %s759_s16 }
 0x14a   : > { %p18_p8 = scmp.ge.s32.totalorder %s21_s20, 4   ;;  %s985_s16 = smov %s763_s17 }
 0x14b   : > { %s986_s17 = smov %s900_s30  ;;  %s987_s18 = smov %s771_s19 }
 0x14c   : > { %s988_s19 = smov %s990_s13  ;;  %20 = sbr.rel (!%p18_p8) target bundleno = 9 (0x9), region = 97 }
 0x151   :  { %398 = vsyncpa [#allocation4], 1 }
 0x152   :  { %400 = vsyncpa [#allocation4 + $0x1], 1 }
 0x153   :  { %401 = vsyncpa [#allocation7], 1 }
 0x154   :  { %402 = vsyncpa [#allocation5], 1 }
 0x155   :  { %404 = vsyncpa [#allocation5 + $0x1], 1 }

</bundles_post_ra>
